<compile_context>
chip_gen: v5e
topology: v5e:2x2
jax: 0.10.0
libtpu: 0.0.40
codegen_flags: <defaults>
</compile_context>

<pallas_src>
from functools import partial

import jax
import jax.numpy as jnp
import numpy as np
from jax.experimental import pallas as pl
from jax.experimental.pallas import tpu as pltpu


# ---------------------------------------------------------------------------
# 1) FeatureWiseAffine: x <- (1 + gamma) * x + beta   (or x <- x + noise)
# ---------------------------------------------------------------------------

def _affine_kernel(g_ref, b_ref, x_ref, o_ref):
    # g_ref/b_ref: (R, 1) per-row constants (sublane-major, splat over lanes).
    # x_ref/o_ref: (R, T) lane-dense tile.  Single broadcast FMA, no casts.
    o_ref[...] = g_ref[...] * x_ref[...] + b_ref[...]


def _shift_kernel(b_ref, x_ref, o_ref):
    o_ref[...] = x_ref[...] + b_ref[...]


def _round_up(x, m):
    return (x + m - 1) // m * m


def _pick_tiles(rows, hw, itemsize, budget_bytes=2 * 1024 * 1024):
    """Lane-dense (R, T) tile: T a 128-multiple (<=2048), R packs full sublanes."""
    T = min(_round_up(hw, 128), 2048)
    r_fit = max(8, (budget_bytes // (T * itemsize)) // 8 * 8)
    if rows <= 8:
        R = rows                                   # full-extent sublane block (always legal)
    else:
        R = min(_round_up(rows, 8), r_fit)
        R = max(8, R // 8 * 8)                     # keep a multiple of 8; ragged blocks masked
    return R, T


def feature_wise_affine(x_nchw, noise_embed, w, bias, *, use_affine_level=False):
    """x_nchw: (B, C, H, W); noise_embed: (B, in_ch); w: (out_f, in_ch); bias: (out_f,)."""
    B, C, H, W = x_nchw.shape
    out_f = w.shape[0]
    assert out_f == C * (2 if use_affine_level else 1)

    # Hoisted Linear: one tiny (B, in_ch) @ (in_ch, out_f) matmul outside the kernel.
    noise = (noise_embed.astype(jnp.float32) @ jnp.transpose(w).astype(jnp.float32)
             + bias.astype(jnp.float32))                           # (B, out_f)

    rows, hw = B * C, H * W
    x2 = x_nchw.reshape(rows, hw)                                  # free view, no transpose
    # bf16-native compute on v6e/v7x; f32 stays f32 (pass f32 params on v5e bf16 inputs).
    pdt = jnp.float32 if x_nchw.dtype == jnp.float32 else x_nchw.dtype

    if use_affine_level:
        g2 = (1.0 + noise[:, :C]).reshape(rows, 1).astype(pdt)     # g = 1 + gamma
        b2 = noise[:, C:].reshape(rows, 1).astype(pdt)             # beta
    else:
        g2 = None
        b2 = noise.reshape(rows, 1).astype(pdt)

    itemsize = jnp.dtype(x_nchw.dtype).itemsize
    R, T = _pick_tiles(rows, hw, itemsize)
    n_s, n_r = pl.cdiv(hw, T), pl.cdiv(rows, R)

    row_spec = pl.BlockSpec((R, 1), lambda s, r: (r, 0))           # per-row constants
    x_spec = pl.BlockSpec((R, T), lambda s, r: (r, s))             # lane-dense x / out tile

    if use_affine_level:
        kernel, args, in_specs = _affine_kernel, (g2, b2, x2), [row_spec, row_spec, x_spec]
    else:
        kernel, args, in_specs = _shift_kernel, (b2, x2), [row_spec, x_spec]

    cost = pl.CostEstimate(
        flops=2 * rows * hw,
        transcendentals=0,
        bytes_accessed=2 * rows * hw * itemsize + 3 * rows * 4,
    )

    y2 = pl.pallas_call(
        kernel,
        out_shape=jax.ShapeDtypeStruct((rows, hw), x_nchw.dtype),
        grid=(n_s, n_r),                                            # spatial first (v7x TC split)
        in_specs=in_specs,
        out_specs=x_spec,
        compiler_params=pltpu.CompilerParams(
            dimension_semantics=("parallel", "parallel")),
        cost_estimate=cost,
    )(*args)

    return y2.reshape(B, C, H, W)


# ---------------------------------------------------------------------------
# 2) Fused GroupNorm + Swish (+ optional FeatureWiseAffine epilogue)
#    Matches the GroupNorm -> Swish prefix of every `Block` in UNet_norm.
# ---------------------------------------------------------------------------

def _gn_swish_kernel(eps, fuse_affine, x_ref, w_ref, b_ref, *rest):
    if fuse_affine:
        g_ref, s_ref, o_ref = rest
    else:
        (o_ref,) = rest

    x = x_ref[...].astype(jnp.float32)                 # (Cg, hw): one (batch, group) slab
    n = float(x.shape[0] * x.shape[1])

    s1 = jnp.sum(jnp.sum(x, axis=1, keepdims=True), axis=0, keepdims=True)       # (1, 1)
    s2 = jnp.sum(jnp.sum(x * x, axis=1, keepdims=True), axis=0, keepdims=True)   # (1, 1)
    mean = s1 * (1.0 / n)
    var = s2 * (1.0 / n) - mean * mean
    inv = jax.lax.rsqrt(var + eps)                     # EUP

    y = (x - mean) * inv
    y = y * w_ref[...].astype(jnp.float32) + b_ref[...].astype(jnp.float32)       # GN affine
    y = y * (1.0 / (1.0 + jnp.exp(-y)))                # Swish (exp on EUP)
    if fuse_affine:                                     # FeatureWiseAffine epilogue
        y = g_ref[...].astype(jnp.float32) * y + s_ref[...].astype(jnp.float32)
    o_ref[...] = y.astype(o_ref.dtype)


def groupnorm_swish(x_nchw, gn_weight, gn_bias, *, groups, eps=1e-5,
                    scale=None, shift=None):
    """Fused GroupNorm + Swish.  Optionally folds `scale * y + shift` (per (b, c))
    as an epilogue — e.g. the feature-wise noise affine — avoiding a second
    read+write of x over HBM."""
    B, C, H, W = x_nchw.shape
    assert C % groups == 0
    Cg, hw = C // groups, H * W

    x4 = x_nchw.reshape(B, groups, Cg, hw)             # free view
    w4 = gn_weight.reshape(groups, Cg, 1).astype(jnp.float32)
    b4 = gn_bias.reshape(groups, Cg, 1).astype(jnp.float32)

    fuse = scale is not None
    args = [x4, w4, b4]
    chan_spec = pl.BlockSpec((None, Cg, 1), lambda b, g: (g, 0, 0))
    in_specs = [
        pl.BlockSpec((None, None, Cg, hw), lambda b, g: (b, g, 0, 0)),
        chan_spec,
        chan_spec,
    ]
    if fuse:
        args += [scale.reshape(B, groups, Cg, 1).astype(jnp.float32),
                 shift.reshape(B, groups, Cg, 1).astype(jnp.float32)]
        bc_spec = pl.BlockSpec((None, None, Cg, 1), lambda b, g: (b, g, 0, 0))
        in_specs += [bc_spec, bc_spec]

    itemsize = jnp.dtype(x_nchw.dtype).itemsize
    cost = pl.CostEstimate(
        flops=10 * B * C * hw,
        transcendentals=B * C * hw,                    # one exp per element (Swish)
        bytes_accessed=2 * B * C * hw * itemsize + 4 * C * 4,
    )

    y4 = pl.pallas_call(
        partial(_gn_swish_kernel, eps, fuse),
        out_shape=jax.ShapeDtypeStruct((B, groups, Cg, hw), x_nchw.dtype),
        grid=(B, groups),
        in_specs=in_specs,
        out_specs=pl.BlockSpec((None, None, Cg, hw), lambda b, g: (b, g, 0, 0)),
        compiler_params=pltpu.CompilerParams(
            dimension_semantics=("parallel", "parallel")),
        cost_estimate=cost,
    )(*args)

    return y4.reshape(B, C, H, W)


# ---------------------------------------------------------------------------
# Pure-JAX references (mirror the PyTorch forward)
# ---------------------------------------------------------------------------

def feature_wise_affine_ref(x, noise_embed, w, bias, *, use_affine_level=False):
    B = x.shape[0]
    noise = (noise_embed @ w.T + bias).reshape(B, -1, 1, 1)
    if use_affine_level:
        gamma, beta = jnp.split(noise, 2, axis=1)
        return (1.0 + gamma) * x + beta
    return x + noise


def groupnorm_swish_ref(x, weight, bias, *, groups, eps=1e-5):
    B, C, H, W = x.shape
    xg = x.reshape(B, groups, -1)
    mean = xg.mean(axis=-1, keepdims=True)
    var = xg.var(axis=-1, keepdims=True)
    xn = ((xg - mean) / jnp.sqrt(var + eps)).reshape(B, C, H, W)
    xn = xn * weight[None, :, None, None] + bias[None, :, None, None]
    return xn * jax.nn.sigmoid(xn)


if __name__ == "__main__":
    key = jax.random.PRNGKey(0)
    B, C, H, W = 2, 4, 16, 16          # x: (batch, channels, H, W)
    in_ch = 32                          # noise-embedding width
    groups = 2                          # GroupNorm groups (must divide C)

    keys = jax.random.split(key, 10)
    x = jax.random.normal(keys[0], (B, C, H, W), dtype=jnp.float32)
    noise_embed = jax.random.normal(keys[1], (B, in_ch), dtype=jnp.float32)

    ok = True

    # --- standalone feature-wise affine, both modes ---
    bound = 1.0 / np.sqrt(in_ch)
    for use_affine, kw, kb in [(False, keys[2], keys[3]), (True, keys[4], keys[5])]:
        out_f = C * (2 if use_affine else 1)
        w = jax.random.uniform(kw, (out_f, in_ch), jnp.float32, -bound, bound)
        bias = jax.random.uniform(kb, (out_f,), jnp.float32, -bound, bound)
        y = jax.block_until_ready(
            feature_wise_affine(x, noise_embed, w, bias, use_affine_level=use_affine))
        y_ref = feature_wise_affine_ref(x, noise_embed, w, bias, use_affine_level=use_affine)
        ok &= bool(jnp.allclose(y, y_ref, atol=1e-5, rtol=1e-5))

    # --- fused GroupNorm + Swish (Block prefix) ---
    gn_w = 1.0 + 0.1 * jax.random.normal(keys[6], (C,), jnp.float32)
    gn_b = 0.1 * jax.random.normal(keys[7], (C,), jnp.float32)
    y = jax.block_until_ready(groupnorm_swish(x, gn_w, gn_b, groups=groups))
    y_ref = groupnorm_swish_ref(x, gn_w, gn_b, groups=groups)
    ok &= bool(jnp.allclose(y, y_ref, atol=1e-4, rtol=1e-4))

    # --- fused GroupNorm + Swish + feature-wise affine epilogue (review fusion) ---
    w_aff = jax.random.uniform(keys[8], (2 * C, in_ch), jnp.float32, -bound, bound)
    b_aff = jax.random.uniform(keys[9], (2 * C,), jnp.float32, -bound, bound)
    noise = noise_embed @ w_aff.T + b_aff
    gamma, beta = noise[:, :C], noise[:, C:]
    y = jax.block_until_ready(
        groupnorm_swish(x, gn_w, gn_b, groups=groups, scale=1.0 + gamma, shift=beta))
    y_ref = (groupnorm_swish_ref(x, gn_w, gn_b, groups=groups)
             * (1.0 + gamma)[:, :, None, None] + beta[:, :, None, None])
    ok &= bool(jnp.allclose(y, y_ref, atol=1e-4, rtol=1e-4))

    print("KERNEL_OK" if ok else "KERNEL_MISMATCH")
</pallas_src>

<mosaic_0001>
module attributes {stable_mosaic.version = 11 : i64} {
  func.func @_shift_kernel(%arg0: i32, %arg1: i32, %arg2: memref<8x1xf32, #tpu.memory_space<vmem>>, %arg3: memref<8x256xf32, #tpu.memory_space<vmem>>, %arg4: memref<8x256xf32, #tpu.memory_space<vmem>>) attributes {dimension_semantics = [#tpu.dimension_semantics<parallel>, #tpu.dimension_semantics<parallel>], iteration_bounds = array<i64: 1, 1>, scalar_prefetch = 0 : i64, scratch_operands = 0 : i64, tpu.core_type = #tpu.core_type<tc>, window_params = [{transform_indices = @transform_0, window_bounds = array<i64: 8, 1>}, {transform_indices = @transform_1, window_bounds = array<i64: 8, 256>}, {transform_indices = @transform_2, window_bounds = array<i64: 8, 256>}]} {
    %c0 = arith.constant 0 : index
    %c0_0 = arith.constant 0 : index
    %0 = vector.load %arg3[%c0, %c0_0] : memref<8x256xf32, #tpu.memory_space<vmem>>, vector<8x256xf32>
    %c0_1 = arith.constant 0 : index
    %c0_2 = arith.constant 0 : index
    %1 = vector.load %arg2[%c0_1, %c0_2] : memref<8x1xf32, #tpu.memory_space<vmem>>, vector<8x1xf32>
    %2 = vector.broadcast %1 : vector<8x1xf32> to vector<8x256xf32>
    %3 = arith.addf %0, %2 : vector<8x256xf32>
    %c0_3 = arith.constant 0 : index
    %c0_4 = arith.constant 0 : index
    %4 = vector.load %arg4[%c0_3, %c0_4] : memref<8x256xf32, #tpu.memory_space<vmem>>, vector<8x256xf32>
    tpu.vector_store %arg4[%c0_3, %c0_4], %3 {strides = array<i32>} : memref<8x256xf32, #tpu.memory_space<vmem>>, vector<8x256xf32>,
    return
  }
  func.func @transform_0(%arg0: i32, %arg1: i32) -> (i32, i32) {
    %c0_i32 = arith.constant 0 : i32
    %c0_i32_0 = arith.constant 0 : i32
    return %arg1, %c0_i32 : i32, i32
  }
  func.func @transform_1(%arg0: i32, %arg1: i32) -> (i32, i32) {
    %c0_i32 = arith.constant 0 : i32
    return %arg1, %arg0 : i32, i32
  }
  func.func @transform_2(%arg0: i32, %arg1: i32) -> (i32, i32) {
    %c0_i32 = arith.constant 0 : i32
    return %arg1, %arg0 : i32, i32
  }
}

</mosaic_0001>

<bundles_post_ra>
// kernel: tpu_custom_call.1
= control target key start
LH: loop header
LB: loop body
LE: loop exit
PB: predicated region body
PF: predicated region fallthrough
CT: control target
= control target key end

     0   :  { %7 = vsyncpa [#allocation3], 0  ;;  %s138_s0 = inlined_call_operand.vmem [shape: f32[8,1], index: 0, kind: input, shape index: {}]   ;;  %s139_s1 = inlined_call_operand.hbm [shape: f32[8,256], index: 1, kind: input, shape index: {}]   ;;  %s140_s2 = inlined_call_operand.hbm [shape: f32[8,256], index: 2, kind: output, shape index: {}]  }
   0x1   :  { %8 = vsyncpa [#allocation4], 0  ;;  %s16_s11 = sshll.u32 %s139_s1, 4  ;;  %s111_s12 = smov [#allocation2]   ;;  %s17_s11 = int_to_ptr.hbm [resolvable:$true] %s16_s11 }
   0x2   :  { %s18_s13 = sshll.u32 %s111_s12, 4  ;;  %s19_s13 = int_to_ptr.vmem [resolvable:$true] %s18_s13 }
   0x3   :  { %21 = dma.hbm_to_vmem [thread:$0]  %s17_s11, 256, %s19_s13, [#allocation3]  }
   0x4   :  { %107 = dma.done.wait [#allocation3], 256  }
   0x5   :  { %108 = vsyncadd [#allocation3], 4294967040  ;;  %v112_v0 = vmov 0   ;;  %v28_v1 = vld [vmem:[%s138_s0] sm:$0xff]  ;;  %v27_v3 = vld [vmem:[#allocation2 + $0x8] sm:$0xff]  ;;  %s113_s16 = smov [#allocation5]  }
   0x6   :  { %58 = vset.pattern.permute.xlu0 %v112_v0  ;;  %v26_v2 = vld [vmem:[#allocation2] sm:$0xff]  ;;  %s43_s17 = sshll.u32 %s113_s16, 4  ;;  %s45_s19 = sshll.u32 %s140_s2, 4  ;;  %s44_s17 = int_to_ptr.vmem [resolvable:$true] %s43_s17  ;;  %s46_s19 = int_to_ptr.hbm [resolvable:$true] %s45_s19 }
   0x7   :  { %31 = vperm.xlu0 %58, %v28_v1  }
  0x79   :  { %v32_v4 = vpop.permute.xlu0 %31 }
  0x7a   :  { %v34_v5 = vadd.f32 %v32_v4, %v26_v2  ;;  %v35_v6 = vadd.f32 %v32_v4, %v27_v3 }
  0x7c   :  { %36 = vst [vmem:[#allocation5] sm:$0xff] %v34_v5 }
  0x7d   :  { %37 = vst [vmem:[#allocation5 + $0x8] sm:$0xff] %v35_v6 }
  0x7e   :  { %48 = dma.vmem_to_hbm [thread:$0]  %s44_s17, 256, %s46_s19, [#allocation4]  }
  0x7f   :  { %109 = dma.done.wait [#allocation4], 256  }
  0x80   :  { %110 = vsyncadd [#allocation4], 4294967040 }
  0x81   :  { %53 = vsyncpa [#allocation3], 1 }
  0x82   :  { %54 = vsyncpa [#allocation4], 1 }

</bundles_post_ra>
